<compile_context>
chip_gen: v7x
topology: tpu7x:2x2x1
jax: 0.10.0
libtpu: 0.0.40
codegen_flags: <defaults>
</compile_context>

<pallas_src>
import math

import jax
import jax.numpy as jnp
from jax.experimental import pallas as pl
from jax.experimental.pallas import tpu as pltpu


def _moe_linear_b_kernel(x_ref, w_ref, o_ref):
    # x_ref: (eb, tb, r) in the caller's dtype; cast to bf16 in-kernel so the
    # wrapper needs no separate XLA cast pass (saves an HBM round-trip on x).
    # w_ref: (eb, r, tn) pre-transposed bf16 -> plain x @ w, no relayout.
    x = x_ref[...].astype(jnp.bfloat16)
    y = jnp.einsum(
        "ebr,ero->ebo", x, w_ref[...], preferred_element_type=jnp.float32
    )
    o_ref[...] = y.astype(o_ref.dtype)


def _tile(dim, target, align):
    """Full dim if it fits in `target` (always a legal block shape), else a
    fixed aligned tile; pl.cdiv grids handle the ragged last block."""
    if dim <= target:
        return dim
    return max(align, (target // align) * align)


def moe_linear_b(x_stacked, w_stacked, *, out_dtype=jnp.bfloat16,
                 tb_target=256, tn_target=512):
    """x_stacked: [E, B, r] (any float dtype), w_stacked: [E, r, out] (bf16).
    Returns [E, B, out] in `out_dtype`."""
    E, B, r = x_stacked.shape
    E2, r2, out_features = w_stacked.shape
    assert E == E2 and r == r2

    tb = _tile(B, tb_target, 16)              # token tile (sublane-aligned)
    tn = _tile(out_features, tn_target, 128)  # lane-dense output tile

    # Experts per grid step: batch all experts only when the whole problem is
    # tiny (collapses to ~one step); otherwise keep eb small so the batched
    # dot's f32 accumulator stays <= ~1 MiB of VMEM.
    if B <= tb and out_features <= tn and E * tb * tn * 4 <= (2 << 20):
        eb = E
    else:
        eb = min(E, 2)

    grid_e = pl.cdiv(E, eb)
    grid_n = pl.cdiv(out_features, tn)
    grid_b = pl.cdiv(B, tb)

    # v7x has 2 TensorCores sharing HBM: avoid a degenerate single-step grid
    # when the output is wide enough to split lane-dense (multiples of 128).
    if grid_e * grid_n * grid_b == 1 and out_features >= 256:
        tn = (((out_features + 1) // 2) + 127) // 128 * 128
        grid_n = pl.cdiv(out_features, tn)

    grid = (grid_e, grid_n, grid_b)

    out_itemsize = jnp.dtype(out_dtype).itemsize
    cost = pl.CostEstimate(
        flops=2 * E * B * out_features * r,
        transcendentals=0,
        bytes_accessed=(
            # x is re-streamed once per output-column tile (B innermost),
            # W streams exactly once, output written once.
            grid_n * x_stacked.size * x_stacked.dtype.itemsize
            + w_stacked.size * w_stacked.dtype.itemsize
            + E * B * out_features * out_itemsize
        ),
    )

    return pl.pallas_call(
        _moe_linear_b_kernel,
        out_shape=jax.ShapeDtypeStruct((E, B, out_features), out_dtype),
        grid_spec=pltpu.PrefetchScalarGridSpec(
            num_scalar_prefetch=0,
            grid=grid,
            # B is the innermost grid axis so the weight block index is
            # unchanged across consecutive steps -> Pallas skips the weight
            # DMA; only the (small) x stream is re-fetched per n-tile.
            in_specs=[
                pl.BlockSpec((eb, tb, r), lambda e, n, b: (e, b, 0)),
                pl.BlockSpec((eb, r, tn), lambda e, n, b: (e, 0, n)),
            ],
            out_specs=pl.BlockSpec((eb, tb, tn), lambda e, n, b: (e, b, n)),
        ),
        compiler_params=pltpu.CompilerParams(
            dimension_semantics=("parallel", "parallel", "parallel"),
            # Above v5e/v6e scoped defaults, headroom below v7x's 64 MiB VMEM.
            vmem_limit_bytes=48 * 1024 * 1024,
        ),
        cost_estimate=cost,
    )(x_stacked, w_stacked)


class MOELinearBPallas:
    """JAX/Pallas re-implementation of MOELinearB."""

    def __init__(self, in_features, out_features, expert_num, key,
                 param_dtype=jnp.bfloat16):
        assert in_features % expert_num == 0
        self.expert_num = expert_num
        self.in_features = in_features
        self.out_features = out_features
        self.r = in_features // expert_num
        self.param_dtype = param_dtype
        # nn.Linear default init: U(-1/sqrt(fan_in), 1/sqrt(fan_in)).
        bound = 1.0 / math.sqrt(self.r)
        # Stored pre-transposed as [E, r, out]: contraction on sublanes,
        # out_features lane-dense -> plain x @ w in the kernel.
        self.weights = jax.random.uniform(
            key, (expert_num, self.r, out_features),
            minval=-bound, maxval=bound, dtype=jnp.float32,
        ).astype(param_dtype)

    def forward_stacked(self, x_stacked, out_dtype=jnp.bfloat16):
        """Fast path: x_stacked [E, B, r] (native dtype, cast in-kernel) ->
        [E, B, out]. bf16 output by default; pass jnp.float32 if downstream
        accumulation needs it."""
        return moe_linear_b(x_stacked, self.weights, out_dtype=out_dtype)

    def __call__(self, x_list, out_dtype=jnp.float32):
        """List API kept for parity with the PyTorch module (list in/out)."""
        x_stacked = jnp.stack(x_list, axis=0)
        y_stacked = self.forward_stacked(x_stacked, out_dtype=out_dtype)
        return [y_stacked[i] for i in range(self.expert_num)]


if __name__ == "__main__":
    key = jax.random.PRNGKey(0)
    k_w, k_x = jax.random.split(key)

    in_features = 32
    out_features = 16
    expert_num = 4
    batch = 8
    r = in_features // expert_num  # 8

    module = MOELinearBPallas(in_features, out_features, expert_num, k_w)

    x_keys = jax.random.split(k_x, expert_num)
    x_list = [
        jax.random.normal(x_keys[i], (batch, r), dtype=jnp.float32)
        for i in range(expert_num)
    ]
    x_stacked = jnp.stack(x_list, axis=0)  # [E, B, r]

    # Reference: bf16-rounded operands, f32 math (matches in-kernel cast and
    # f32 MXU accumulation).
    x_ref = x_stacked.astype(jnp.bfloat16).astype(jnp.float32)
    w_ref = module.weights.astype(jnp.float32)  # [E, r, out]
    ref = jnp.einsum("ebr,ero->ebo", x_ref, w_ref)

    # Default fast path: bf16 output.
    y_bf16 = jax.block_until_ready(module.forward_stacked(x_stacked))
    assert y_bf16.shape == (expert_num, batch, out_features)
    assert y_bf16.dtype == jnp.bfloat16
    assert jnp.allclose(y_bf16.astype(jnp.float32), ref, atol=3e-2, rtol=3e-2)

    # Explicit f32 output path.
    y_f32 = jax.block_until_ready(
        module.forward_stacked(x_stacked, out_dtype=jnp.float32))
    assert y_f32.dtype == jnp.float32
    assert jnp.allclose(y_f32, ref, atol=1e-3, rtol=1e-3)

    # List API parity with the PyTorch forward (list in, list out, f32).
    y_list = [jax.block_until_ready(y) for y in module(x_list)]
    for i in range(expert_num):
        assert y_list[i].shape == (batch, out_features)
        assert jnp.allclose(y_list[i], ref[i], atol=1e-3, rtol=1e-3)

    print("KERNEL_OK")
</pallas_src>

<mosaic_0001>
module attributes {stable_mosaic.version = 11 : i64} {
  func.func @_moe_linear_b_kernel(%arg0: i32, %arg1: i32, %arg2: i32, %arg3: memref<4x8x8xf32, #tpu.memory_space<vmem>>, %arg4: memref<4x8x16xbf16, #tpu.memory_space<vmem>>, %arg5: memref<4x8x16xbf16, #tpu.memory_space<vmem>>) attributes {dimension_semantics = [#tpu.dimension_semantics<parallel>, #tpu.dimension_semantics<parallel>, #tpu.dimension_semantics<parallel>], iteration_bounds = array<i64: 1, 1, 1>, scalar_prefetch = 0 : i64, scratch_operands = 0 : i64, tpu.core_type = #tpu.core_type<tc>, window_params = [{transform_indices = @transform_0, window_bounds = array<i64: 4, 8, 8>}, {transform_indices = @transform_1, window_bounds = array<i64: 4, 8, 16>}, {transform_indices = @transform_2, window_bounds = array<i64: 4, 8, 16>}]} {
    %c0 = arith.constant 0 : index
    %c0_0 = arith.constant 0 : index
    %c0_1 = arith.constant 0 : index
    %0 = vector.load %arg3[%c0, %c0_0, %c0_1] : memref<4x8x8xf32, #tpu.memory_space<vmem>>, vector<4x8x8xf32>
    %1 = arith.truncf %0 : vector<4x8x8xf32> to vector<4x8x8xbf16>
    %c0_2 = arith.constant 0 : index
    %c0_3 = arith.constant 0 : index
    %c0_4 = arith.constant 0 : index
    %2 = vector.load %arg4[%c0_2, %c0_3, %c0_4] : memref<4x8x16xbf16, #tpu.memory_space<vmem>>, vector<4x8x16xbf16>
    "tpu.trace_start"() <{level = 10 : i32, message = "ebr,ero->ebo"}> : () -> ()
    %cst = arith.constant dense<0.000000e+00> : vector<4x8x16xf32>
    %3 = tpu.matmul %1, %2, %cst {dimension_numbers = #tpu.dot_dimension_numbers<[2], [1], [1], [2], [0, 0, 0, 1, 1, 2], [0], [0]>} : vector<4x8x8xbf16>, vector<4x8x16xbf16>, vector<4x8x16xf32> -> vector<4x8x16xf32>
    "tpu.trace_stop"() : () -> ()
    %4 = arith.truncf %3 : vector<4x8x16xf32> to vector<4x8x16xbf16>
    %c0_5 = arith.constant 0 : index
    %c0_6 = arith.constant 0 : index
    %c0_7 = arith.constant 0 : index
    %5 = vector.load %arg5[%c0_5, %c0_6, %c0_7] : memref<4x8x16xbf16, #tpu.memory_space<vmem>>, vector<4x8x16xbf16>
    tpu.vector_store %arg5[%c0_5, %c0_6, %c0_7], %4 {strides = array<i32>} : memref<4x8x16xbf16, #tpu.memory_space<vmem>>, vector<4x8x16xbf16>,
    return
  }
  func.func @transform_0(%arg0: i32, %arg1: i32, %arg2: i32) -> (i32, i32, i32) {
    %c0_i32 = arith.constant 0 : i32
    %c0_i32_0 = arith.constant 0 : i32
    return %arg0, %arg2, %c0_i32 : i32, i32, i32
  }
  func.func @transform_1(%arg0: i32, %arg1: i32, %arg2: i32) -> (i32, i32, i32) {
    %c0_i32 = arith.constant 0 : i32
    %c0_i32_0 = arith.constant 0 : i32
    return %arg0, %c0_i32, %arg1 : i32, i32, i32
  }
  func.func @transform_2(%arg0: i32, %arg1: i32, %arg2: i32) -> (i32, i32, i32) {
    %c0_i32 = arith.constant 0 : i32
    return %arg0, %arg2, %arg1 : i32, i32, i32
  }
}

</mosaic_0001>

<bundles_post_ra>
// kernel: tpu_custom_call.1
= control target key start
LH: loop header
LB: loop body
LE: loop exit
PB: predicated region body
PF: predicated region fallthrough
CT: control target
= control target key end

     0   :  { %7 = vsyncpa [#allocation3], 0  ;;  %s465_s0 = inlined_call_operand.hbm [shape: f32[4,8,8], index: 0, kind: input, shape index: {}]   ;;  %s466_s1 = inlined_call_operand.hbm [shape: bf16[4,8,16], index: 1, kind: input, shape index: {}]   ;;  %s467_s2 = inlined_call_operand.hbm [shape: bf16[4,8,16], index: 2, kind: output, shape index: {}]  }
   0x1   :  { %8 = vsyncpa [#allocation6], 0 }
   0x2   :  { %9 = vsyncpa [#allocation4], 0  ;;  %s383_s9 = smov [#allocation2]   ;;  %s311_s13 = scalar_lea.hbm %s465_s0, 512 }
   0x3   :  { %s15_s10 = sshll.u32 %s383_s9, 4  ;;  %p312_p0 = scmp.ne.s32.totalorder %s465_s0, %s311_s13  ;;  %s16_s10 = int_to_ptr.vmem [resolvable:$true] %s15_s10 }
   0x4   :  { %p315_p1 = scmp.lt.u32.totalorder %s311_s13, %s465_s0 }
   0x6   :  { %p317_p2 = pnand %p315_p1, %p312_p0 }
   0x8   :  { %320 = shalt.err (!%p317_p2)
}
   0x9   :  { %s321_s18 = scalar_lea.vmem %s16_s10, 512  ;;  %p326_p4 = scmp.lt.s32.totalorder %s16_s10, %s16_s10 }
   0xa   :  { %p322_p3 = scmp.ne.s32.totalorder %s16_s10, %s321_s18  ;;  %p327_p5 = scmp.lt.s32.totalorder %s321_s18, %s321_s18 }
   0xc   :  { %p328_p6 = por %p327_p5, %p326_p4 }
   0xe   :  { %p329_p7 = pnand %p328_p6, %p322_p3 }
  0x10   :  { %332 = shalt.err (!%p329_p7)
}
  0x11   :  { %s384_s19 = smov 128   ;;  %s385_s20 = smov 8  }
  0x12   :  { %21 = dma.hbm_to_vmem [thread:$0]  %s465_s0, 512, %s16_s10, [#allocation3], %s384_s19, %s384_s19, %s385_s20  }
  0x13   :  { %s386_s23 = smov [#allocation5]   ;;  %s333_s27 = scalar_lea.hbm %s466_s1, 256 }
  0x14   :  { %s27_s24 = sshll.u32 %s386_s23, 4  ;;  %p334_p8 = scmp.ne.s32.totalorder %s466_s1, %s333_s27  ;;  %s28_s24 = int_to_ptr.vmem [resolvable:$true] %s27_s24 }
  0x15   :  { %p337_p9 = scmp.lt.u32.totalorder %s333_s27, %s466_s1 }
  0x17   :  { %p339_p10 = pnand %p337_p9, %p334_p8 }
  0x19   :  { %342 = shalt.err (!%p339_p10)
}
  0x1a   :  { %s343_s4 = scalar_lea.vmem %s28_s24, 256  ;;  %p348_p12 = scmp.lt.s32.totalorder %s28_s24, %s28_s24 }
  0x1b   :  { %p344_p11 = scmp.ne.s32.totalorder %s28_s24, %s343_s4  ;;  %p349_p13 = scmp.lt.s32.totalorder %s343_s4, %s343_s4 }
  0x1d   :  { %p350_p0 = por %p349_p13, %p348_p12 }
  0x1f   :  { %p351_p1 = pnand %p350_p0, %p344_p11 }
  0x21   :  { %354 = shalt.err (!%p351_p1)
}
  0x22   :  { %s387_s0 = smov 64   ;;  %s388_s5 = smov 4  }
  0x23   :  { %33 = dma.hbm_to_vmem [thread:$0]  %s466_s1, 256, %s28_s24, [#allocation6], %s387_s0, %s387_s0, %s388_s5  }
  0x24   :  { %377 = dma.done.wait [#allocation3], 512  }
  0x25   :  { %378 = vsyncadd [#allocation3], 4294966784 }
  0x26   :  { %379 = dma.done.wait [#allocation6], 256  }
  0x27   :  { %380 = vsyncadd [#allocation6], 4294967040  ;;  %v389_v0 = vmov 0.0   ;;  %vm390_vm0 = vmmov 0   ;;  %vm57_vm1 = vcmask 1043456   ;;  %v41_v3 = vld [vmem:[#allocation2] sm:$0xff] }
  0x28   :  { %278 = vmatprep.subr.bf16.mxu0 %v389_v0  ;;  %284 = vmatprep.subr.bf16.mxu1 %v389_v0  ;;  %v49_v1 = vld [vmem:[#allocation5] sm:$0xf]  ;;  %v50_v2 = vld [vmem:[#allocation5 + $0x4] sm:$0xf]  ;;  %v45_v6 = vpack.c.bf16 %v41_v3, %v41_v3  ;;  %v42_v7 = vld [vmem:[#allocation2 + $0x8] sm:$0xff]  ;;  %vm53_vm2 = vcmask 64512  }
  0x29   :  { %280 = vmatprep.mubr.msk.bf16.mxu0 %vm390_vm0, %v389_v0  ;;  %286 = vmatprep.mubr.msk.bf16.mxu1 %vm390_vm0, %v389_v0  ;;  %v59_v4 = vsel %vm57_vm1, %v49_v1, 0  ;;  %v105_v5 = vsel %vm57_vm1, %v50_v2, 0  ;;  %v51_v8 = vld [vmem:[#allocation5 + $0x8] sm:$0xf]  ;;  %v46_v9 = vpack.c.bf16 %v42_v7, %v42_v7  ;;  %v52_v10 = vld [vmem:[#allocation5 + $0xc] sm:$0xf] }
  0x2a   :  { %279 = vmatpush3.bf16.msra.mxu0 %v59_v4  ;;  %285 = vmatpush3.bf16.msra.mxu1 %v105_v5  ;;  %v151_v11 = vsel %vm57_vm1, %v51_v8, 0  ;;  %v197_v12 = vsel %vm57_vm1, %v52_v10, 0  ;;  %v43_v13 = vld [vmem:[#allocation2 + $0x10] sm:$0xff]  ;;  %v44_v14 = vld [vmem:[#allocation2 + $0x18] sm:$0xff]  ;;  %vm243_vm3 = vcmask 125952   ;;  %s391_s1 = smov [#allocation7]  }
  0x2b   :  { %290 = vmatprep.subr.bf16.mxu0 %v389_v0  ;;  %296 = vmatprep.subr.bf16.mxu1 %v389_v0  ;;  %v47_v15 = vpack.c.bf16 %v43_v13, %v43_v13  ;;  %v48_v16 = vpack.c.bf16 %v44_v14, %v44_v14  ;;  %s253_s8 = sshll.u32 %s391_s1, 4  ;;  %s254_s8 = int_to_ptr.vmem [resolvable:$true] %s253_s8 }
  0x2c   :  { %s355_s9 = scalar_lea.vmem %s254_s8, 256  ;;  %p360_p3 = scmp.lt.s32.totalorder %s254_s8, %s254_s8 }
  0x2d   :  { %281 = vmatmul.mubr.msk.bf16.vlgmr.msra.gmra.mrb[0].mxu0 %vm53_vm2, %v45_v6  ;;  %287 = vmatmul.mubr.msk.bf16.vlgmr.msra.gmra.mrb[0].mxu1 %vm53_vm2, %v46_v9  ;;  %p356_p2 = scmp.ne.s32.totalorder %s254_s8, %s355_s9  ;;  %p361_p4 = scmp.lt.s32.totalorder %s355_s9, %s355_s9 }
  0x2e   :  { %291 = vmatpush3.bf16.msra.mxu0 %v151_v11  ;;  %297 = vmatpush3.bf16.msra.mxu1 %v197_v12 }
  0x2f   :  { %292 = vmatprep.mubr.msk.bf16.mxu0 %vm390_vm0, %v389_v0  ;;  %298 = vmatprep.mubr.msk.bf16.mxu1 %vm390_vm0, %v389_v0  ;;  %p362_p5 = por %p361_p4, %p360_p3 }
  0x31   :  { %p363_p6 = pnand %p362_p5, %p356_p2 }
  0x35   :  { %293 = vmatmul.mubr.msk.bf16.vlgmr.msra.gmra.mrb[4].mxu0 %vm53_vm2, %v47_v15  ;;  %299 = vmatmul.mubr.msk.bf16.vlgmr.msra.gmra.mrb[4].mxu1 %vm53_vm2, %v48_v16 }
 0x100   :  { %v95_v17 = vpop.f32.mrb[0].mxu0  ;;  %v141_v18 = vpop.f32.mrb[0].mxu1 }
 0x101   :  { %v239_v19 = vpack.c.bf16 %v95_v17, %v95_v17  ;;  %v240_v20 = vpack.c.bf16 %v141_v18, %v141_v18  ;;  %v282_v21 = vpop.f32.mrb[1].mxu0  ;;  %v288_v22 = vpop.f32.mrb[1].mxu1 }
 0x102   :  { %v98_v23 = vpop.f32.mrb[2].mxu0  ;;  %v144_v24 = vpop.f32.mrb[2].mxu1 }
 0x103   :  { %244 = vst.msk [vmem:[#allocation7] sm:$0xf] %vm243_vm3, %v239_v19  ;;  %245 = vst.msk [vmem:[#allocation7 + $0x4] sm:$0xf] %vm243_vm3, %v240_v20  ;;  %v283_v25 = vpop.f32.mrb[3].mxu0  ;;  %v289_v26 = vpop.f32.mrb[3].mxu1 }
 0x108   :  { %v187_v27 = vpop.f32.mrb[4].mxu0  ;;  %v233_v28 = vpop.f32.mrb[4].mxu1 }
 0x109   :  { %v241_v29 = vpack.c.bf16 %v187_v27, %v187_v27  ;;  %v242_v30 = vpack.c.bf16 %v233_v28, %v233_v28  ;;  %v294_v31 = vpop.f32.mrb[5].mxu0  ;;  %v300_v32 = vpop.f32.mrb[5].mxu1 }
 0x10a   :  { %v190_v33 = vpop.f32.mrb[6].mxu0  ;;  %v236_v34 = vpop.f32.mrb[6].mxu1 }
 0x10b   :  { %246 = vst.msk [vmem:[#allocation7 + $0x8] sm:$0xf] %vm243_vm3, %v241_v29  ;;  %247 = vst.msk [vmem:[#allocation7 + $0xc] sm:$0xf] %vm243_vm3, %v242_v30  ;;  %v295_v35 = vpop.f32.mrb[7].mxu0  ;;  %v301_v36 = vpop.f32.mrb[7].mxu1 }
 0x10c   :  { %366 = shalt.err (!%p363_p6)
}
 0x10d   :  { %s367_s12 = scalar_lea.hbm %s467_s2, 256 }
 0x10e   :  { %p368_p7 = scmp.ne.s32.totalorder %s467_s2, %s367_s12  ;;  %p371_p8 = scmp.lt.u32.totalorder %s367_s12, %s467_s2 }
 0x110   :  { %p373_p9 = pnand %p371_p8, %p368_p7 }
 0x112   :  { %376 = shalt.err (!%p373_p9)
}
 0x113   :  { %259 = dma.vmem_to_hbm [thread:$0]  %s254_s8, 256, %s467_s2, [#allocation4], %s387_s0, %s387_s0, %s388_s5  }
 0x114   :  { %381 = dma.done.wait [#allocation4], 256  }
 0x115   :  { %382 = vsyncadd [#allocation4], 4294967040 }
 0x116   :  { %263 = vsyncpa [#allocation3], 1 }
 0x117   :  { %264 = vsyncpa [#allocation6], 1 }
 0x118   :  { %265 = vsyncpa [#allocation4], 1 }

</bundles_post_ra>
